<compile_context>
chip_gen: v5e
topology: v5e:2x2
jax: 0.10.0
libtpu: 0.0.40
codegen_flags: <defaults>
</compile_context>

<pallas_src>
import functools

import jax
import jax.numpy as jnp
from jax.experimental import pallas as pl
from jax.experimental.pallas import tpu as pltpu


# ------------------------------------------------------------------
# tiling helpers
# ------------------------------------------------------------------

def _pick_batch_tile(b, pref):
    """Batch-tile: a divisor of b, <= pref; prefer >= 2 batch tiles so the
    'parallel' grid axis can shard across v7x's two TensorCores (a no-op on
    single-TC v5e/v6e)."""
    if b <= pref:
        if b > 1 and b % 2 == 0:
            return b // 2
        return b
    best = 1
    for cand in range(1, pref + 1):
        if b % cand == 0:
            best = cand
    return best


def _pick_row_tile(h, patch, per_row_bytes, target_bytes, max_rows=128):
    """Row-tile: multiple of `patch`, divides h, tile bytes <= target_bytes
    (so the double-buffered input stays far below the scoped VMEM limit)."""
    best = patch
    th = patch
    while th <= min(h, max_rows):
        if h % th == 0 and th * per_row_bytes <= target_bytes:
            best = th
        th += patch
    return best


def _pick_aligned_div(total, pref, align=8):
    """Largest divisor of `total` that is a multiple of `align` and <= pref;
    falls back to `total` (full extent is always BlockSpec-legal)."""
    best = None
    for cand in range(align, min(pref, total) + 1, align):
        if total % cand == 0:
            best = cand
    return best if best is not None else total


# ------------------------------------------------------------------
# Pallas kernels
# ------------------------------------------------------------------

def _row_pool_kernel(x_ref, o_ref, *, patch, n_sub):
    """Fused backbone stage 1: stream NCHW image tiles straight from HBM and
    accumulate per-(channel, patch-row-offset, column) sums.

    grid = (B // tb, H // th):
      axis 0 ("parallel")  — batch tiles (megacore shardable)
      axis 1 ("arbitrary") — image-row reduction; the output block is
                             resident across this axis (accumulator pattern).

    x_ref : (tb, C, th, W)        image tile, th = n_sub * patch rows
    o_ref : (tb, C*patch, W) f32  row-sum accumulator / output
    """
    @pl.when(pl.program_id(1) == 0)
    def _init():
        o_ref[...] = jnp.zeros_like(o_ref)

    x = x_ref[...].astype(jnp.float32)          # f32 accumulation on the VPU
    tb, c, _, w = x.shape
    acc = o_ref[...]
    for r in range(n_sub):                       # static unroll (<= 16)
        blk = x[:, :, r * patch:(r + 1) * patch, :]        # (tb, C, P, W)
        # Layout-free reshape: minor (lane) dim W unchanged, leading dims
        # regrouped row-major into the sublane axis (P == 8).
        acc = acc + blk.reshape(tb, c * patch, w)
    o_ref[...] = acc


def _project_kernel(x_ref, w_ref, b_ref, o_ref):
    """Fused backbone stage 2: pooled row-sums -> feature projection.

    x_ref : (tb, K) f32   flattened row-sums (K = C*P*W)
    w_ref : (K, F)  bf16  expanded projection weight (1/N patch count folded in)
    b_ref : (1, F)  f32   bias
    o_ref : (tb, F) f32   features (lane-dense, F multiple of 256 for the MXU)
    """
    o_ref[...] = (jnp.dot(x_ref[...].astype(jnp.bfloat16), w_ref[...],
                          preferred_element_type=jnp.float32)
                  + b_ref[...])


def _global_embed_kernel(x_ref, w1_ref, b1_ref, g1_ref, beta1_ref,
                         w2_ref, b2_ref, o_ref):
    """Fused GlobalEmbedding head.

    Linear(Din, H) -> BatchNorm1d(H) -> ReLU -> Linear(H, Dout)
    -> BatchNorm1d(Dout, affine=False).
    BatchNorm uses training-mode batch statistics (biased var, eps=1e-5).
    Matmul operands are bf16 (f32 accumulation); BN/ReLU stay f32 on the VPU.
    """
    eps = 1e-5
    x = x_ref[...]                                               # (B, Din) f32

    h = jnp.dot(x.astype(jnp.bfloat16), w1_ref[...],
                preferred_element_type=jnp.float32) + b1_ref[...]   # (B, H)

    mu1 = jnp.mean(h, axis=0, keepdims=True)
    var1 = jnp.mean((h - mu1) * (h - mu1), axis=0, keepdims=True)
    h = (h - mu1) * jax.lax.rsqrt(var1 + eps)
    h = h * g1_ref[...] + beta1_ref[...]
    h = jnp.maximum(h, 0.0)                                      # ReLU

    y = jnp.dot(h.astype(jnp.bfloat16), w2_ref[...],
                preferred_element_type=jnp.float32) + b2_ref[...]   # (B, Dout)

    mu2 = jnp.mean(y, axis=0, keepdims=True)
    var2 = jnp.mean((y - mu2) * (y - mu2), axis=0, keepdims=True)
    o_ref[...] = (y - mu2) * jax.lax.rsqrt(var2 + eps)           # affine=False


# ------------------------------------------------------------------
# Module-like wrapper
# ------------------------------------------------------------------

class BaselineEncoderPallas:
    """JAX/Pallas port of BaselineEncoder (synthetic deterministic weights)."""

    def __init__(self, key, *, in_chans=3, patch=8, feature_dim=256,
                 hidden_dim=512, output_dim=128,
                 batch_tile=128, row_tile=None, tile_target_bytes=4 << 20):
        assert patch % 8 == 0, "patch must be a multiple of the sublane tile (8)"
        self.in_chans = in_chans
        self.patch = patch
        self.feature_dim = feature_dim
        self.hidden_dim = hidden_dim
        self.output_dim = output_dim
        self.batch_tile = batch_tile
        self.row_tile = row_tile
        self.tile_target_bytes = tile_target_bytes

        dp = in_chans * patch * patch
        self.dp = dp
        self._w_exp_cache = {}

        k = jax.random.split(key, 3)

        # Backbone stand-in (patch-embedding weights); f32 master copy kept
        # for the pure-JAX correctness reference.
        self.w_patch = (jax.random.normal(k[0], (dp, feature_dim), jnp.float32)
                        * (1.0 / jnp.sqrt(dp)))
        self.b_patch = jnp.zeros((1, feature_dim), jnp.float32)

        # GlobalEmbedding parameters (PyTorch-style init scales, BN defaults).
        self.w1 = (jax.random.normal(k[1], (feature_dim, hidden_dim), jnp.float32)
                   * (1.0 / jnp.sqrt(feature_dim))).astype(jnp.bfloat16)
        self.b1 = jnp.zeros((1, hidden_dim), jnp.float32)
        self.bn1_gamma = jnp.ones((1, hidden_dim), jnp.float32)
        self.bn1_beta = jnp.zeros((1, hidden_dim), jnp.float32)
        self.w2 = (jax.random.normal(k[2], (hidden_dim, output_dim), jnp.float32)
                   * (1.0 / jnp.sqrt(hidden_dim))).astype(jnp.bfloat16)
        self.b2 = jnp.zeros((1, output_dim), jnp.float32)

    # -------------------------------------------------- expanded projection
    def _expanded_weight(self, w_dim, n_patches):
        """Host-side (init/trace-time) weight expansion.

        w_exp[(c*P + py)*W + w, f] = w_patch[c*P*P + py*P + (w % P), f] / N
        so that   rowsum.reshape(B, C*P*W) @ w_exp == mean_patches @ w_patch.
        The 1/N fold removes the per-tile scaling from the kernel epilogue.
        """
        key = (int(w_dim), int(n_patches))
        cached = self._w_exp_cache.get(key)
        if cached is not None:
            return cached
        c, p, f = self.in_chans, self.patch, self.feature_dim
        w3 = self.w_patch.reshape(c, p, p, f)                    # (c, py, px, f)
        px = jnp.arange(w_dim) % p                               # (W,)
        w_exp = jnp.take(w3, px, axis=2)                         # (c, py, W, f)
        w_exp = (w_exp / float(n_patches)).reshape(c * p * w_dim, f)
        w_exp = w_exp.astype(jnp.bfloat16)
        self._w_exp_cache[key] = w_exp
        return w_exp

    # -------------------------------------------------- backbone forward
    def vit_forward(self, x):
        b, c, h, w = x.shape
        p = self.patch
        assert c == self.in_chans
        assert h % p == 0 and w % p == 0, "spatial dims must be divisible by patch"
        n = (h // p) * (w // p)
        f = self.feature_dim
        cp = c * p

        # ---- stage 1: fused streaming row-pool (reads x directly; no
        #      patchify round-trip, no zero padding).
        tb = _pick_batch_tile(b, self.batch_tile)
        per_row_bytes = tb * c * w * x.dtype.itemsize
        if self.row_tile is not None:
            th = self.row_tile
            assert th % p == 0 and h % th == 0
        else:
            th = _pick_row_tile(h, p, per_row_bytes, self.tile_target_bytes)
        n_sub = th // p

        pool = functools.partial(_row_pool_kernel, patch=p, n_sub=n_sub)
        rowsum = pl.pallas_call(
            pool,
            out_shape=jax.ShapeDtypeStruct((b, cp, w), jnp.float32),
            grid=(b // tb, h // th),
            in_specs=[pl.BlockSpec((tb, c, th, w), lambda i, j: (i, 0, j, 0))],
            out_specs=pl.BlockSpec((tb, cp, w), lambda i, j: (i, 0, 0)),
            compiler_params=pltpu.CompilerParams(
                dimension_semantics=("parallel", "arbitrary"),
                vmem_limit_bytes=32 * 1024 * 1024),
        )(x)

        # The only inter-kernel relayout is on this tiny (B, C*P, W) tensor
        # (H/P times smaller than x); letting XLA flatten it avoids an
        # in-kernel lane reshape while keeping extra HBM traffic negligible.
        pooled = rowsum.reshape(b, cp * w)

        # ---- stage 2: pool-then-project matmul (1/N folded into w_exp).
        w_exp = self._expanded_weight(w, n)
        tb2 = _pick_aligned_div(b, self.batch_tile)
        if tb2 == b and b % 16 == 0:
            tb2 = b // 2        # >= 2 grid steps so v7x can use both TCs
        k_dim = cp * w
        return pl.pallas_call(
            _project_kernel,
            out_shape=jax.ShapeDtypeStruct((b, f), jnp.float32),
            grid=(b // tb2,),
            in_specs=[
                pl.BlockSpec((tb2, k_dim), lambda i: (i, 0)),
                pl.BlockSpec((k_dim, f), lambda i: (0, 0)),
                pl.BlockSpec((1, f), lambda i: (0, 0)),
            ],
            out_specs=pl.BlockSpec((tb2, f), lambda i: (i, 0)),
            compiler_params=pltpu.CompilerParams(
                dimension_semantics=("parallel",),
                vmem_limit_bytes=32 * 1024 * 1024),
        )(pooled, w_exp, self.b_patch)

    # -------------------------------------------------- projection head
    def global_embed(self, feats):
        # Whole-batch fused head: BatchNorm1d needs full-batch statistics, so
        # the (B, Din) input, (B, hidden) f32 activations and output stay
        # VMEM-resident for one call.  With the default dims (256/512/128)
        # this is fine up to B of a few thousand; beyond that a batch-tiled
        # two-pass BN (sum / sum-of-squares accumulation) is required.
        # TODO(synk): batch-tiled two-pass BatchNorm for very large B.
        b = feats.shape[0]
        vmem = pl.BlockSpec(memory_space=pltpu.MemorySpace.VMEM)
        return pl.pallas_call(
            _global_embed_kernel,
            out_shape=jax.ShapeDtypeStruct((b, self.output_dim), jnp.float32),
            in_specs=[vmem] * 7,
            out_specs=vmem,
            compiler_params=pltpu.CompilerParams(
                vmem_limit_bytes=32 * 1024 * 1024),
        )(feats, self.w1, self.b1, self.bn1_gamma, self.bn1_beta,
          self.w2, self.b2)

    def forward(self, x, get_local=False):
        # matches PyTorch: ret = self.vit_forward(x); return (ret, ret, ret)
        ret = self.vit_forward(x)
        return (ret, ret, ret)


# ------------------------------------------------------------------
# Main
# ------------------------------------------------------------------

if __name__ == "__main__":
    key = jax.random.PRNGKey(0)
    k_param, k_x = jax.random.split(key)

    # row_tile=16 -> 2 row-reduction steps; batch 4 -> 2 "parallel" batch
    # tiles, exercising both the accumulator init/finalize path and the
    # megacore-shardable axis at small shapes.
    enc = BaselineEncoderPallas(k_param, in_chans=3, patch=8,
                                feature_dim=256, hidden_dim=512,
                                output_dim=128, row_tile=16)

    # small NCHW input: batch=4, channels=3, 32x32 -> 16 patches/img
    x = jax.random.normal(k_x, (4, 3, 32, 32), jnp.float32)

    ret, ret2, ret3 = enc.forward(x)
    # GlobalEmbedding is built in __init__ (not used by forward in the
    # reference); exercise its fused Pallas kernel as well.
    emb = enc.global_embed(ret)
    jax.block_until_ready((ret, ret2, ret3, emb))

    assert ret.shape == (4, 256) and emb.shape == (4, 128)
    assert ret is ret2 and ret is ret3

    # --- correctness: pure-JAX f32 reference for the backbone ---
    b, c, h, w = x.shape
    p = enc.patch
    n = (h // p) * (w // p)
    xp = x.reshape(b, c, h // p, p, w // p, p).transpose(0, 2, 4, 1, 3, 5)
    mean = xp.reshape(b, n, c * p * p).mean(axis=1)
    ref = mean @ enc.w_patch + enc.b_patch
    assert float(jnp.max(jnp.abs(ret - ref))) < 5e-2

    # --- head invariants: BatchNorm1d(affine=False) output has per-feature
    # batch mean ~0 and biased variance ~1 ---
    assert float(jnp.max(jnp.abs(jnp.mean(emb, axis=0)))) < 1e-3
    assert float(jnp.max(jnp.abs(jnp.var(emb, axis=0) - 1.0))) < 5e-2
    assert bool(jnp.all(jnp.isfinite(emb)))

    print("KERNEL_OK")
</pallas_src>

<mosaic_0001>
module attributes {stable_mosaic.version = 11 : i64} {
  func.func @_row_pool_kernel(%arg0: i32, %arg1: i32, %arg2: memref<2x3x16x32xf32, #tpu.memory_space<vmem>>, %arg3: memref<2x24x32xf32, #tpu.memory_space<vmem>>) attributes {dimension_semantics = [#tpu.dimension_semantics<parallel>, #tpu.dimension_semantics<arbitrary>], iteration_bounds = array<i64: 2, 2>, scalar_prefetch = 0 : i64, scratch_operands = 0 : i64, tpu.core_type = #tpu.core_type<tc>, window_params = [{transform_indices = @transform_0, window_bounds = array<i64: 2, 3, 16, 32>}, {transform_indices = @transform_1, window_bounds = array<i64: 2, 24, 32>}]} {
    %c0_i32 = arith.constant 0 : i32
    %0 = arith.cmpi eq, %arg1, %c0_i32 : i32
    %1 = arith.extui %0 : i1 to i32
    %c0_i32_0 = arith.constant 0 : i32
    %2 = arith.cmpi ne, %1, %c0_i32_0 : i32
    scf.if %2 {
      %cst = arith.constant 0.000000e+00 : f32
      %12 = vector.broadcast %cst : f32 to vector<2x24x32xf32>
      %c0_10 = arith.constant 0 : index
      %c0_11 = arith.constant 0 : index
      %c0_12 = arith.constant 0 : index
      %13 = vector.load %arg3[%c0_10, %c0_11, %c0_12] : memref<2x24x32xf32, #tpu.memory_space<vmem>>, vector<2x24x32xf32>
      tpu.vector_store %arg3[%c0_10, %c0_11, %c0_12], %12 {strides = array<i32>} : memref<2x24x32xf32, #tpu.memory_space<vmem>>, vector<2x24x32xf32>,
    } else {
    }
    %c0 = arith.constant 0 : index
    %c0_1 = arith.constant 0 : index
    %c0_2 = arith.constant 0 : index
    %c0_3 = arith.constant 0 : index
    %3 = vector.load %arg2[%c0, %c0_1, %c0_2, %c0_3] : memref<2x3x16x32xf32, #tpu.memory_space<vmem>>, vector<2x3x16x32xf32>
    %c0_4 = arith.constant 0 : index
    %c0_5 = arith.constant 0 : index
    %c0_6 = arith.constant 0 : index
    %4 = vector.load %arg3[%c0_4, %c0_5, %c0_6] : memref<2x24x32xf32, #tpu.memory_space<vmem>>, vector<2x24x32xf32>
    %5 = vector.extract_strided_slice %3 {offsets = [0, 0, 0, 0], sizes = [2, 3, 8, 32], strides = [1, 1, 1, 1]} : vector<2x3x16x32xf32> to vector<2x3x8x32xf32>
    %6 = vector.shape_cast %5 : vector<2x3x8x32xf32> to vector<2x24x32xf32>
    %7 = arith.addf %4, %6 : vector<2x24x32xf32>
    %8 = vector.extract_strided_slice %3 {offsets = [0, 0, 8, 0], sizes = [2, 3, 8, 32], strides = [1, 1, 1, 1]} : vector<2x3x16x32xf32> to vector<2x3x8x32xf32>
    %9 = vector.shape_cast %8 : vector<2x3x8x32xf32> to vector<2x24x32xf32>
    %10 = arith.addf %7, %9 : vector<2x24x32xf32>
    %c0_7 = arith.constant 0 : index
    %c0_8 = arith.constant 0 : index
    %c0_9 = arith.constant 0 : index
    %11 = vector.load %arg3[%c0_7, %c0_8, %c0_9] : memref<2x24x32xf32, #tpu.memory_space<vmem>>, vector<2x24x32xf32>
    tpu.vector_store %arg3[%c0_7, %c0_8, %c0_9], %10 {strides = array<i32>} : memref<2x24x32xf32, #tpu.memory_space<vmem>>, vector<2x24x32xf32>,
    return
  }
  func.func @transform_0(%arg0: i32, %arg1: i32) -> (i32, i32, i32, i32) {
    %c0_i32 = arith.constant 0 : i32
    %c0_i32_0 = arith.constant 0 : i32
    %c0_i32_1 = arith.constant 0 : i32
    return %arg0, %c0_i32, %arg1, %c0_i32_0 : i32, i32, i32, i32
  }
  func.func @transform_1(%arg0: i32, %arg1: i32) -> (i32, i32, i32) {
    %c0_i32 = arith.constant 0 : i32
    %c0_i32_0 = arith.constant 0 : i32
    %c0_i32_1 = arith.constant 0 : i32
    return %arg0, %c0_i32, %c0_i32_0 : i32, i32, i32
  }
}

</mosaic_0001>

<bundles_post_ra>
// kernel: tpu_custom_call.1
= control target key start
LH: loop header
LB: loop body
LE: loop exit
PB: predicated region body
PF: predicated region fallthrough
CT: control target
= control target key end

     0   :  { %6 = vsyncpa [#allocation3], 0  ;;  %s838_s0 = inlined_call_operand.hbm [shape: f32[4,3,32,32], index: 0, kind: input, shape index: {}]   ;;  %s839_s1 = inlined_call_operand.hbm [shape: f32[4,24,32], index: 1, kind: output, shape index: {}]  }
   0x1   :  { %8 = vsyncpa [#allocation3 + $0x1], 0 }
   0x2   :  { %9 = vsyncpa [#allocation4], 0 }
   0x3   :  { %11 = vsyncpa [#allocation4 + $0x1], 0  ;;  %s612_s6 = smov 0   ;;  %s614_s7 = smov 0  }
   0x4   :  { %s616_s8 = smov 0   ;;  %s618_s9 = smov 0  }
   0x5   :  { %s620_s10 = smov 0   ;;  %s622_s11 = smov 0  }
   0x6   :  { %s624_s12 = smov 0   ;;  %s626_s13 = smov 0  }
   0x7   :  { %s628_s14 = smov 0   ;;  %s630_s15 = smov 0  }
   0x8   :  { %s632_s16 = smov 0  }
   0x9 LB: > { %845 = sst [smem:[#allocation11_spill]] %s571_s11  ;;  %s334_s17 = sadd.s32 4294967295, %s591_s16   ;;  %s591_s16 = sphi %s632_s16, %s17_s16   ;;  %s587_s15 = sphi %s630_s15, %s860_s15   ;;  %s583_s14 = sphi %s628_s14, %s859_s14   ;;  %s579_s13 = sphi %s626_s13, %s858_s13   ;;  %s575_s12 = sphi %s624_s12, %s857_s12   ;;  %s571_s11 = sphi %s622_s11, %s856_s11   ;;  %s567_s10 = sphi %s620_s10, %s865_s10   ;;  %s563_s9 = sphi %s618_s9, %s864_s9   ;;  %s559_s8 = sphi %s616_s8, %s863_s8   ;;  %s555_s7 = sphi %s614_s7, %s862_s7   ;;  %s551_s6 = sphi %s612_s6, %s861_s6  }
   0xa   : > { %846 = sst [smem:[#allocation12_spill]] %s583_s14  ;;  %s335_s18 = sadd.s32 4294967294, %s591_s16  }
   0xb   : > { %847 = sst [smem:[#allocation13_spill]] %s587_s15  ;;  %s26_s19 = sadd.s32 1, %s583_s14 }
   0xc   : > { %s29_s20 = sadd.s32 1, %s587_s15  ;;  %p27_p0 = scmp.ge.s32.totalorder %s26_s19, 2 }
   0xd   : > { %s38_s21 = sadd.s32 1, %s571_s11  ;;  %p45_p1 = scmp.ne.s32.totalorder %s571_s11, %s567_s10 }
   0xe   : > { %p46_p2 = scmp.eq.s32.totalorder %s591_s16, 0  ;;  %s867_s19 = smov (%p27_p0, %s26_s19), 0 }
   0xf   : > { %848 = sst [smem:[#allocation14_spill]] %s867_s19  ;;  %s869_s20 = smov (!%p27_p0, %s29_s20), %s587_s15 }
  0x10   : > { %s34_s22 = ssub.s32 %s583_s14, %s867_s19  ;;  %p678_p3 = por %p46_p2, %p45_p1 }
  0x11   : > { %p31_p4 = scmp.ge.s32.totalorder %s869_s20, 2  ;;  %p51_p5 = scmp.ne.s32.totalorder %s567_s10, %s563_s9 }
  0x12   : > { %p52_p6 = scmp.eq.s32.totalorder %s334_s17, 0  ;;  %s64_s24 = sadd.s32 1, %s559_s8 }
  0x13   : > { %s871_s20 = smov (%p31_p4, %s869_s20), 0  ;;  %p74_p8 = scmp.ne.s32.totalorder %s559_s8, %s555_s7 }
  0x14   : > { %850 = sst [smem:[#allocation15_spill]] %s871_s20  ;;  %p686_p7 = por %p52_p6, %p51_p5 }
  0x15   : > { %s33_s26 = ssub.s32 %s587_s15, %s871_s20  ;;  %p75_p9 = scmp.eq.s32.totalorder %s334_s17, 3 }
  0x16   : > { %s35_s27 = sor.u32 %s34_s22, %s33_s26  ;;  %p62_p10 = scmp.eq.s32.totalorder %s33_s26, 0 }
  0x17   : > { %p36_p11 = scmp.eq.s32.totalorder %s35_s27, 0  ;;  %p694_p12 = por %p75_p9, %p74_p8 }
  0x18   : > { %s699_s29 = scalar_select %p62_p10, %s559_s8, %s64_s24  }
  0x19   : > { %s702_s30 = scalar_select %p36_p11, %s571_s11, %s38_s21  }
  0x1a   : > { %p80_p13 = scmp.ne.s32.totalorder %s555_s7, %s551_s6  ;;  %p81_p0 = scmp.eq.s32.totalorder %s335_s18, 3 }
  0x1b   : > { %853 = sst [smem:[#allocation16_spill]] %s702_s30  ;;  %p337_p2 = scmp.ge.s32.totalorder %s591_s16, 4 }
  0x1c   : > { %p706_p1 = por %p81_p0, %p80_p13 }
  0x1d   : > { %97 = sbr.rel (%p337_p2) target bundleno = 51 (0x33), region = 16 }
  0x22   : > { %s101_s3 = sand.u32 1, %s571_s11   ;;  %s339_s5 = sshll.u32 %s583_s14, 1 }
  0x23   : > { %s351_s4 = smul.u32 96, %s101_s3  ;;  %s593_s17 = smov 512  }
  0x24   : > { %s352_s9 = smul.u32 24, %s587_s15  ;;  %357 = sst [smem:[#allocation7]] (%p678_p3), %s593_s17 }
  0x25   : > { %s356_s27 = scalar_select %p678_p3, [#allocation0], [#allocation8] }
  0x26   : > { %s111_s18 = sadd.s32 %s352_s9, %s339_s5  ;;  %s105_s20 = scalar_lea.vmem [#allocation2], %s351_s4 }
  0x27   : > { %s341_s21 = sshll.u32 %s111_s18, 3  ;;  %s128_s19 = sshll.u32 %s105_s20, 4  ;;  %s129_s19 = int_to_ptr.vmem [resolvable:$true] %s128_s19 }
  0x28   : > { %s113_s26 = scalar_lea.hbm %s838_s0, %s341_s21  ;;  %s594_s30 = smov 256  }
  0x29   : > { %358 = sst [smem:[#allocation7 + $0x1]] (%p678_p3), %s594_s30  ;;  %s126_s14 = sshll.u32 %s113_s26, 4  ;;  %s127_s14 = int_to_ptr.hbm [resolvable:$true] %s126_s14 }
  0x2a   : > { %s118_s15 = sld [smem:[%s356_s27]]   ;;  %s595_s11 = smov 2  }
  0x2b   : > { %359 = sst [smem:[#allocation7 + $0x2]] (%p678_p3), %s595_s11  ;;  %s596_s5 = smov 128  }
  0x2c   : > { %360 = sst [smem:[#allocation7 + $0x3]] (%p678_p3), %s596_s5  ;;  %s597_s9 = smov 8  }
  0x2d   : > { %361 = sst [smem:[#allocation7 + $0x4]] (%p678_p3), %s596_s5  ;;  %s102_s17 = scalar_lea.sflag [#allocation3], %s101_s3 }
  0x2e   : > { %362 = sst [smem:[#allocation7 + $0x5]] (%p678_p3), %s597_s9  ;;  %s598_s30 = smov [#allocation6]  }
  0x30   : > { %s342_s20 = sshll.u32 %s118_s15, 26 }
  0x31   : > { %s343_s4 = sadd.s32 134217728, %s342_s20 }
  0x32   : > { %363 = dma.general (%p678_p3), %s127_s14, 1536, %s129_s19, %s102_s17, %s598_s30, [#allocation7], %s343_s4, 0  }
  0x33 PF: > { %p344_p4 = scmp.ge.s32.totalorder %s591_s16, 1  ;;  %p149_p5 = scmp.lt.s32.totalorder %s591_s16, 5 }
  0x35   : > { %p150_p6 = pnand %p344_p4, %p149_p5 }
  0x36   : > { %s155_s11 = sand.u32 (!%p150_p6), 1, %s567_s10  }
  0x37   : > { %153 = sbr.rel (%p150_p6) target bundleno = 92 (0x5c), region = 24  ;;  %s156_s21 = scalar_lea.sflag (!%p150_p6), [#allocation3], %s155_s11 }
  0x38   : > { %s353_s18 = smul.u32 (!%p150_p6), 96, %s155_s11 }
  0x3a   : > { %s736_s22 = scalar_lea.vmem (!%p150_p6), [#allocation2], %s353_s18 }
  0x3c   : > { %542 = dma.done.wait (%p686_p7), %s156_s21, 1536  }
  0x3d   : > { %544 = vsyncadd (%p686_p7), %s156_s21, 4294965760  ;;  %s176_s14 = sand.u32 1, %s555_s7   ;;  %p345_p3 = scmp.ne.s32.totalorder %s575_s12, 0 }
  0x3e   : > { %s354_s15 = smul.u32 48, %s176_s14 }
  0x3f   : > { %185 = sbr.rel (%p345_p3) target bundleno = 75 (0x4b), region = 32 }
  0x40   : > { %s745_s19 = scalar_lea.vmem [#allocation5], %s354_s15 }
  0x44   : > { %vm186_vm0 = vcmask 261120   ;;  %v599_v0 = vmov 0.0  }
  0x45   : > { %187 = vst.msk [vmem:[%s745_s19] sm:$0xff] %vm186_vm0, %v599_v0 }
  0x46   : > { %188 = vst.msk [vmem:[%s745_s19 + $0x8] sm:$0xff] %vm186_vm0, %v599_v0 }
  0x47   : > { %189 = vst.msk [vmem:[%s745_s19 + $0x10] sm:$0xff] %vm186_vm0, %v599_v0 }
  0x48   : > { %190 = vst.msk [vmem:[%s745_s19 + $0x18] sm:$0xff] %vm186_vm0, %v599_v0 }
  0x49   : > { %191 = vst.msk [vmem:[%s745_s19 + $0x20] sm:$0xff] %vm186_vm0, %v599_v0 }
  0x4a   : > { %192 = vst.msk [vmem:[%s745_s19 + $0x28] sm:$0xff] %vm186_vm0, %v599_v0 }
  0x4b PF: > { %v193_v1 = vld [vmem:[%s736_s22] sm:$0xff]  ;;  %v194_v2 = vld [vmem:[%s736_s22 + $0x8] sm:$0xff]  ;;  %s355_s12 = smul.u32 48, %s579_s13  ;;  %v195_v5 = vld [vmem:[%s736_s22 + $0x10] sm:$0xff]  ;;  %vm223_vm1 = vcmask 261120   ;;  %s244_s13 = sshll.u32 %s745_s19, 4  ;;  %s245_s13 = int_to_ptr.vmem [resolvable:$true] %s244_s13 }
  0x4c   : > { %v205_v3 = vld [vmem:[%s745_s19] sm:$0xff]  ;;  %v196_v6 = vld [vmem:[%s736_s22 + $0x18] sm:$0xff]  ;;  %v198_v10 = vld [vmem:[%s736_s22 + $0x28] sm:$0xff]  ;;  %s231_s26 = scalar_lea.sflag [#allocation4], %s176_s14  ;;  %s489_s4 = scalar_lea.hbm %s839_s1, 96 }
  0x4d   : > { %v211_v4 = vadd.f32 %v205_v3, %v193_v1  ;;  %v206_v7 = vld [vmem:[%s745_s19 + $0x8] sm:$0xff]  ;;  %v197_v9 = vld [vmem:[%s736_s22 + $0x20] sm:$0xff]  ;;  %s243_s3 = scalar_lea.hbm %s839_s1, %s355_s12  ;;  %v199_v14 = vld [vmem:[%s736_s22 + $0x30] sm:$0xff] }
  0x4e   : > { %v212_v8 = vadd.f32 %v206_v7, %v195_v5  ;;  %v207_v11 = vld [vmem:[%s745_s19 + $0x10] sm:$0xff]  ;;  %v200_v15 = vld [vmem:[%s736_s22 + $0x38] sm:$0xff]  ;;  %v202_v20 = vld [vmem:[%s736_s22 + $0x48] sm:$0xff]  ;;  %s246_s24 = sshll.u32 %s243_s3, 4  ;;  %s247_s24 = int_to_ptr.hbm [resolvable:$true] %s246_s24 }
  0x4f   : > { %v217_v12 = vadd.f32 %v211_v4, %v194_v2  ;;  %v213_v13 = vadd.f32 %v207_v11, %v197_v9  ;;  %v208_v16 = vld [vmem:[%s745_s19 + $0x18] sm:$0xff]  ;;  %v201_v19 = vld [vmem:[%s736_s22 + $0x40] sm:$0xff]  ;;  %v203_v24 = vld [vmem:[%s736_s22 + $0x50] sm:$0xff]  ;;  %s483_s27 = sshra.s32 %s247_s24, 4  ;;  %s484_s27 = int_to_ptr.hbm [resolvable:$true] %s483_s27 }
  0x50   : > { %v218_v17 = vadd.f32 %v212_v8, %v196_v6  ;;  %v214_v18 = vadd.f32 %v208_v16, %v199_v14  ;;  %v209_v21 = vld [vmem:[%s745_s19 + $0x20] sm:$0xff]  ;;  %v204_v25 = vld [vmem:[%s736_s22 + $0x58] sm:$0xff]  ;;  %s485_s5 = scalar_lea.hbm %s484_s27, 48  ;;  %p490_p10 = scmp.lt.s32.totalorder %s484_s27, %s839_s1 }
  0x51   : > { %224 = vst.msk [vmem:[%s745_s19] sm:$0xff] %vm223_vm1, %v217_v12  ;;  %v219_v22 = vadd.f32 %v213_v13, %v198_v10  ;;  %v215_v23 = vadd.f32 %v209_v21, %v201_v19  ;;  %v210_v26 = vld [vmem:[%s745_s19 + $0x28] sm:$0xff]  ;;  %p486_p7 = scmp.ne.s32.totalorder %s484_s27, %s485_s5  ;;  %p491_p11 = scmp.lt.s32.totalorder %s489_s4, %s485_s5 }
  0x52   : > { %225 = vst.msk [vmem:[%s745_s19 + $0x8] sm:$0xff] %vm223_vm1, %v218_v17  ;;  %v220_v27 = vadd.f32 %v214_v18, %v200_v15  ;;  %v216_v28 = vadd.f32 %v210_v26, %v203_v24 }
  0x53   : > { %226 = vst.msk [vmem:[%s745_s19 + $0x10] sm:$0xff] %vm223_vm1, %v219_v22  ;;  %v221_v29 = vadd.f32 %v215_v23, %v202_v20  ;;  %p487_p8 = pnand %p486_p7, %p694_p12  ;;  %p492_p13 = por %p491_p11, %p490_p10 }
  0x54   : > { %227 = vst.msk [vmem:[%s745_s19 + $0x18] sm:$0xff] %vm223_vm1, %v220_v27  ;;  %v222_v30 = vadd.f32 %v216_v28, %v204_v25 }
  0x55   : > { %228 = vst.msk [vmem:[%s745_s19 + $0x20] sm:$0xff] %vm223_vm1, %v221_v29  ;;  %p488_p9 = pneg %p487_p8 }
  0x56   : > { %229 = vst.msk [vmem:[%s745_s19 + $0x28] sm:$0xff] %vm223_vm1, %v222_v30 }
  0x57   : > { %p493_p0 = pnand %p492_p13, %p488_p9 }
  0x59   : > { %496 = shalt.err (!%p493_p0)
}
  0x5a   : > { %s600_s11 = smov 128   ;;  %s601_s18 = smov 8  }
  0x5b   : > { %365 = dma.vmem_to_hbm [thread:$0]  (%p694_p12), %s245_s13, 768, %s247_s24, %s231_s26, %s600_s11, %s600_s11, %s601_s18  }
  0x5c PF: > { %p371_p2 = scmp.ge.s32.totalorder %s591_s16, 2  ;;  %s261_s21 = sand.u32 1, %s551_s6  }
  0x5d   : > { %s262_s22 = scalar_lea.sflag [#allocation4], %s261_s21 }
  0x5e   : > { %p368_p4 = pnand %p371_p2, %p706_p1 }
  0x60   : > { %p369_p5 = pneg %p368_p4 }
  0x62   : > { %546 = dma.done.wait (%p369_p5), %s262_s22, 768  }
  0x63   : > { %548 = vsyncadd (%p369_p5), %s262_s22, 4294966528  ;;  %s17_s16 = sadd.s32 1, %s591_s16   ;;  %s855_s28 = sld [smem:[#allocation11_spill]] }
  0x64   : > { %p14_p6 = scmp.ge.s32.totalorder %s17_s16, 6   ;;  %s856_s11 = sld [smem:[#allocation16_spill]] }
  0x65   : > { %s857_s12 = sld [smem:[#allocation12_spill]]  ;;  %s861_s6 = smov %s555_s7 }
  0x66   : > { %s858_s13 = sld [smem:[#allocation13_spill]]  ;;  %s862_s7 = smov %s559_s8 }
  0x67   : > { %s859_s14 = sld [smem:[#allocation14_spill]]  ;;  %s863_s8 = smov %s699_s29 }
  0x68   : > { %s860_s15 = sld [smem:[#allocation15_spill]]  ;;  %s864_s9 = smov %s567_s10 }
  0x69   : > { %s865_s10 = smov %s855_s28  ;;  %16 = sbr.rel (!%p14_p6) target bundleno = 9 (0x9), region = 78 }
  0x6e   :  { %268 = vsyncpa [#allocation3], 1 }
  0x6f   :  { %270 = vsyncpa [#allocation3 + $0x1], 1 }
  0x70   :  { %271 = vsyncpa [#allocation4], 1 }
  0x71   :  { %273 = vsyncpa [#allocation4 + $0x1], 1 }

</bundles_post_ra>
